<compile_context>
chip_gen: v6e
topology: v6e:2x2x1
jax: 0.10.0
libtpu: 0.0.40
codegen_flags: <defaults>
</compile_context>

<pallas_src>
import jax
import jax.numpy as jnp
from jax.experimental import pallas as pl
from jax.experimental.pallas import tpu as pltpu


def _keep_weight_dma_kernel(w_ref, o_ref, sem):
    # Single streaming HBM -> HBM DMA: no VMEM staging, no grid steps.
    cp = pltpu.make_async_copy(w_ref, o_ref, sem)
    cp.start()
    cp.wait()


def keep_weight(weight: jax.Array, *, materialize: bool = False) -> jax.Array:
    """Pallas implementation of KeepWeight.forward().

    materialize=False (default; exact module semantics): forward() is a pure
    identity, so return the parameter itself -- no copy, no kernel launch.

    materialize=True: produce a fresh HBM buffer via one direct HBM -> HBM
    async DMA (works for any rank / shape / dtype).
    """
    if not materialize:
        return weight

    nbytes = int(weight.size) * jnp.dtype(weight.dtype).itemsize
    return pl.pallas_call(
        _keep_weight_dma_kernel,
        out_shape=jax.ShapeDtypeStruct(weight.shape, weight.dtype),
        in_specs=[pl.BlockSpec(memory_space=pl.ANY)],
        out_specs=pl.BlockSpec(memory_space=pl.ANY),
        scratch_shapes=[pltpu.SemaphoreType.DMA(())],
        cost_estimate=pl.CostEstimate(
            flops=0, transcendentals=0, bytes_accessed=2 * nbytes),
    )(weight)


if __name__ == "__main__":
    key = jax.random.PRNGKey(0)
    k1, k2, k3 = jax.random.split(key, 3)

    # Small GPTQ-style stored weight.
    weight = jax.random.normal(k1, (64, 256), dtype=jnp.float32)

    # Exact forward() semantics: identity, no copy, no kernel.
    fast = keep_weight(weight)
    assert fast is weight

    # Explicitly materialized copy via a single HBM -> HBM DMA.
    out = jax.block_until_ready(keep_weight(weight, materialize=True))
    assert out.shape == weight.shape and out.dtype == weight.dtype
    assert bool(jnp.array_equal(out, weight))

    # Awkward, non tile-aligned shape: the whole-array DMA path has no
    # (8,128) / sublane constraints, so arbitrary shapes just work.
    weight2 = jax.random.normal(k2, (100, 40), dtype=jnp.float32)
    out2 = jax.block_until_ready(keep_weight(weight2, materialize=True))
    assert out2.shape == weight2.shape and out2.dtype == weight2.dtype
    assert bool(jnp.array_equal(out2, weight2))

    # Different dtype (bf16) to confirm dtype-agnostic copy.
    weight3 = jax.random.normal(k3, (128, 256), dtype=jnp.bfloat16)
    out3 = jax.block_until_ready(keep_weight(weight3, materialize=True))
    assert out3.shape == weight3.shape and out3.dtype == weight3.dtype
    assert bool(jnp.array_equal(out3, weight3))

    print("KERNEL_OK")
</pallas_src>

<mosaic_0001>
module attributes {stable_mosaic.version = 11 : i64} {
  func.func @_keep_weight_dma_kernel(%arg0: memref<64x256xf32, #tpu.memory_space<any>>, %arg1: memref<64x256xf32, #tpu.memory_space<any>>, %arg2: memref<!tpu.dma_semaphore, #tpu.memory_space<semaphore_mem>>) attributes {dimension_semantics = [], scalar_prefetch = 0 : i64, scratch_operands = 1 : i64, tpu.core_type = #tpu.core_type<tc>} {
    tpu.enqueue_dma source(%arg0 : memref<64x256xf32, #tpu.memory_space<any>>) target(%arg1 : memref<64x256xf32, #tpu.memory_space<any>>) target_semaphore(%arg2 : memref<!tpu.dma_semaphore, #tpu.memory_space<semaphore_mem>>)
    tpu.wait_dma2 semaphore(%arg2 : memref<!tpu.dma_semaphore, #tpu.memory_space<semaphore_mem>>) src(%arg0 : memref<64x256xf32, #tpu.memory_space<any>>) dst(%arg1 : memref<64x256xf32, #tpu.memory_space<any>>)
    return
  }
}

</mosaic_0001>

<bundles_post_ra>
// kernel: tpu_custom_call.1
= control target key start
LH: loop header
LB: loop body
LE: loop exit
PB: predicated region body
PF: predicated region fallthrough
CT: control target
= control target key end

     0   :  { %s29_s6 = smov [#allocation2]   ;;  %s30_s7 = smov 131072   ;;  %s48_s0 = inlined_call_operand.hbm [shape: f32[64,256], index: 0, kind: input, shape index: {}]   ;;  %s49_s1 = inlined_call_operand.hbm [shape: f32[64,256], index: 1, kind: output, shape index: {}]  }
   0x1   :  { %s31_s8 = smov 0  }
   0x2   :  { %12 = dma.general %s48_s0, 2048, %s49_s1, %s29_s6, %s30_s7, [#allocation4], %s31_s8, 0  }
   0x3   :  { %27 = dma.done.wait [#allocation2], 2048 }
   0x4   :  { %28 = vsyncadd [#allocation2], 4294965248 }
   0x5   :  { %17 = vsyncmov [#allocation2] }
   0x8   :  { %s18_s13 = vpop.sfrf %17 }
   0x9   :  { %p23_p0 = scmp.ne.s32.totalorder %s18_s13, 0 }
   0xb   :  { %22 = shalt.err (%p23_p0)  }

</bundles_post_ra>
